<compile_context>
chip_gen: v7x
topology: tpu7x:2x2x1
jax: 0.10.0
libtpu: 0.0.40
codegen_flags: <defaults>
</compile_context>

<pallas_src>
import functools

import jax
import jax.numpy as jnp
from jax.experimental import pallas as pl
from jax.experimental.pallas import tpu as pltpu

_HIDDEN = 64       # module's hidden width
_LANE = 128        # lane-dense padded width for hidden / action dims


def _round_up(x, m):
    return (x + m - 1) // m * m


def _actor_kernel(state_ref, wp_ref, bp_ref, mu_ref, *, sp_pad, p_max):
    # state block (TB, SP_pad) f32 -> bf16 for the MXU.
    x = state_ref[...].astype(jnp.bfloat16)

    # fc1 + relu.  Packed-weight rows [0, sp_pad) hold w1 (cols >= 64 are 0,
    # so the padded hidden lanes come out as relu(0 + 0) = 0).
    w1 = wp_ref[0:sp_pad, :]
    h1 = jnp.dot(x, w1, preferred_element_type=jnp.float32)
    h1 = jnp.maximum(h1 + bp_ref[0:1, :], 0.0)                     # (TB, 128) f32

    # fc2 + relu.  Rows [sp_pad, sp_pad+128) hold w2 (zero-padded).
    w2 = wp_ref[sp_pad:sp_pad + _LANE, :]
    h2 = jnp.dot(h1.astype(jnp.bfloat16), w2, preferred_element_type=jnp.float32)
    h2 = jnp.maximum(h2 + bp_ref[1:2, :], 0.0)                     # (TB, 128) f32

    # mu_head + tanh * p_max.  Rows [sp_pad+128, sp_pad+256) hold wmu.
    wmu = wp_ref[sp_pad + _LANE:sp_pad + 2 * _LANE, :]
    mu = jnp.dot(h2.astype(jnp.bfloat16), wmu, preferred_element_type=jnp.float32)
    mu_ref[...] = jnp.tanh(mu + bp_ref[2:3, :]) * p_max            # lane-dense store


def pack_actor_params(params, state_dim):
    """One-time packing: weights -> single bf16 buffer, biases -> (3,128) f32,
    sigma computed here (hoisted out of the kernel)."""
    w1, b1, w2, b2, wmu, bmu, log_std = params
    action_dim = wmu.shape[1]
    sp_pad = _round_up(state_dim, 16)   # bf16 sublane alignment for row slices

    def pad2(w, rows, cols):
        return jnp.pad(w, ((0, rows - w.shape[0]), (0, cols - w.shape[1])))

    w_packed = jnp.concatenate(
        [pad2(w1, sp_pad, _LANE), pad2(w2, _LANE, _LANE), pad2(wmu, _LANE, _LANE)],
        axis=0).astype(jnp.bfloat16)                       # (sp_pad + 256, 128)

    def pad_row(b):
        b = jnp.asarray(b, jnp.float32).reshape(1, -1)
        return jnp.pad(b, ((0, 0), (0, _LANE - b.shape[1])))

    b_packed = jnp.concatenate([pad_row(b1), pad_row(b2), pad_row(bmu)], axis=0)

    sigma = jnp.clip(jnp.exp(jnp.asarray(log_std, jnp.float32).reshape(-1)),
                     1e-6, 1.0)                            # (action_dim,)
    return w_packed, b_packed, sigma, sp_pad, action_dim


def actor_forward(state, packed, p_max):
    """state: (B, state_dim) f32.  Returns (mu (B, action_dim), sigma (action_dim,))."""
    w_packed, b_packed, sigma, sp_pad, action_dim = packed
    B, state_dim = state.shape

    # Batch block: multiple of 8 rows; cap at 256 so big batches grid over B.
    tb = 256 if B >= 256 else _round_up(B, 8)
    b_pad = _round_up(B, tb)
    state_p = jnp.pad(state.astype(jnp.float32),
                      ((0, b_pad - B), (0, sp_pad - state_dim)))

    mu_padded = pl.pallas_call(
        functools.partial(_actor_kernel, sp_pad=sp_pad, p_max=float(p_max)),
        grid=(b_pad // tb,),
        in_specs=[
            pl.BlockSpec((tb, sp_pad), lambda i: (i, 0)),                   # state
            pl.BlockSpec((sp_pad + 2 * _LANE, _LANE), lambda i: (0, 0)),    # weights (resident)
            pl.BlockSpec((3, _LANE), lambda i: (0, 0)),                     # biases  (resident)
        ],
        out_specs=pl.BlockSpec((tb, _LANE), lambda i: (i, 0)),
        out_shape=jax.ShapeDtypeStruct((b_pad, _LANE), jnp.float32),
        compiler_params=pltpu.CompilerParams(dimension_semantics=("parallel",)),
    )(state_p, w_packed, b_packed)

    return mu_padded[:B, :action_dim], sigma


def init_actor_params(key, state_dim, action_dim, hidden=_HIDDEN):
    """Deterministic synthetic parameters (PyTorch-Linear-like uniform init)."""
    ks = jax.random.split(key, 6)

    def linear(kw, kb, fan_in, fan_out):
        bound = 1.0 / jnp.sqrt(jnp.float32(fan_in))
        w = jax.random.uniform(kw, (fan_in, fan_out), jnp.float32, -bound, bound)
        b = jax.random.uniform(kb, (1, fan_out), jnp.float32, -bound, bound)
        return w, b

    w1, b1 = linear(ks[0], ks[1], state_dim, hidden)
    w2, b2 = linear(ks[2], ks[3], hidden, hidden)
    wmu, bmu = linear(ks[4], ks[5], hidden, action_dim)
    log_std = jnp.zeros((1, action_dim), jnp.float32)   # nn.Parameter(torch.zeros(action_dim))
    return (w1, b1, w2, b2, wmu, bmu, log_std)


def actor_forward_ref(state, params, p_max, use_bf16=False):
    """Pure-JAX reference.  use_bf16=True mirrors the kernel's MXU precision."""
    w1, b1, w2, b2, wmu, bmu, log_std = params

    if use_bf16:
        def mm(a, w):
            return jnp.dot(a.astype(jnp.bfloat16), w.astype(jnp.bfloat16),
                           preferred_element_type=jnp.float32)
    else:
        def mm(a, w):
            return a @ w

    x = jnp.maximum(mm(state, w1) + b1, 0.0)
    x = jnp.maximum(mm(x, w2) + b2, 0.0)
    mu = jnp.tanh(mm(x, wmu) + bmu) * p_max
    sigma = jnp.clip(jnp.exp(log_std.reshape(-1)), 1e-6, 1.0)
    return mu, sigma


if __name__ == "__main__":
    key = jax.random.PRNGKey(0)
    k_param, k_state = jax.random.split(key)

    batch = 8
    state_dim = 32
    action_dim = 8
    p_max = 2.0

    params = init_actor_params(k_param, state_dim, action_dim)
    packed = pack_actor_params(params, state_dim)     # one-time pack (weights bf16, sigma hoisted)
    state = jax.random.normal(k_state, (batch, state_dim), jnp.float32)

    mu, sigma = actor_forward(state, packed, p_max)
    jax.block_until_ready((mu, sigma))

    mu_ref_bf16, sigma_ref = actor_forward_ref(state, params, p_max, use_bf16=True)
    mu_ref_f32, _ = actor_forward_ref(state, params, p_max, use_bf16=False)

    assert mu.shape == (batch, action_dim) and sigma.shape == (action_dim,)
    # Tight check against a reference using the same bf16 MXU operands.
    assert jnp.allclose(mu, mu_ref_bf16, atol=1e-5, rtol=1e-5)
    # Loose check against the full-f32 PyTorch-equivalent math.
    assert jnp.allclose(mu, mu_ref_f32, atol=5e-2, rtol=5e-2)
    assert jnp.allclose(sigma, sigma_ref, atol=1e-6, rtol=1e-6)

    print("KERNEL_OK")
</pallas_src>

<mosaic_0001>
module attributes {stable_mosaic.version = 11 : i64} {
  func.func @_actor_kernel(%arg0: i32, %arg1: memref<8x32xf32, #tpu.memory_space<vmem>>, %arg2: memref<288x128xbf16, #tpu.memory_space<vmem>>, %arg3: memref<3x128xf32, #tpu.memory_space<vmem>>, %arg4: memref<8x128xf32, #tpu.memory_space<vmem>>) attributes {dimension_semantics = [#tpu.dimension_semantics<parallel>], iteration_bounds = array<i64: 1>, scalar_prefetch = 0 : i64, scratch_operands = 0 : i64, tpu.core_type = #tpu.core_type<tc>, window_params = [{transform_indices = @transform_0, window_bounds = array<i64: 8, 32>}, {pipeline_mode = #tpu.pipeline_mode<synchronous>, transform_indices = @transform_1, window_bounds = array<i64: 288, 128>}, {pipeline_mode = #tpu.pipeline_mode<synchronous>, transform_indices = @transform_2, window_bounds = array<i64: 3, 128>}, {transform_indices = @transform_3, window_bounds = array<i64: 8, 128>}]} {
    %c0 = arith.constant 0 : index
    %c0_0 = arith.constant 0 : index
    %0 = vector.load %arg1[%c0, %c0_0] : memref<8x32xf32, #tpu.memory_space<vmem>>, vector<8x32xf32>
    %1 = arith.truncf %0 : vector<8x32xf32> to vector<8x32xbf16>
    %c0_1 = arith.constant 0 : index
    %c0_2 = arith.constant 0 : index
    %2 = vector.load %arg2[%c0_1, %c0_2] : memref<288x128xbf16, #tpu.memory_space<vmem>>, vector<32x128xbf16>
    %cst = arith.constant dense<0.000000e+00> : vector<8x128xf32>
    %3 = tpu.matmul %1, %2, %cst {dimension_numbers = #tpu.dot_dimension_numbers<[1], [0], [0], [1], [0, 0, 1, 1], [], []>} : vector<8x32xbf16>, vector<32x128xbf16>, vector<8x128xf32> -> vector<8x128xf32>
    %c0_3 = arith.constant 0 : index
    %c0_4 = arith.constant 0 : index
    %4 = vector.load %arg3[%c0_3, %c0_4] : memref<3x128xf32, #tpu.memory_space<vmem>>, vector<1x128xf32>
    %5 = vector.broadcast %4 : vector<1x128xf32> to vector<8x128xf32>
    %6 = arith.addf %3, %5 : vector<8x128xf32>
    %cst_5 = arith.constant 0.000000e+00 : f32
    %7 = vector.broadcast %cst_5 : f32 to vector<8x128xf32>
    %8 = arith.maximumf %6, %7 : vector<8x128xf32>
    %c32 = arith.constant 32 : index
    %c0_6 = arith.constant 0 : index
    %9 = vector.load %arg2[%c32, %c0_6] : memref<288x128xbf16, #tpu.memory_space<vmem>>, vector<128x128xbf16>
    %10 = arith.truncf %8 : vector<8x128xf32> to vector<8x128xbf16>
    %cst_7 = arith.constant dense<0.000000e+00> : vector<8x128xf32>
    %11 = tpu.matmul %10, %9, %cst_7 {dimension_numbers = #tpu.dot_dimension_numbers<[1], [0], [0], [1], [0, 0, 1, 1], [], []>} : vector<8x128xbf16>, vector<128x128xbf16>, vector<8x128xf32> -> vector<8x128xf32>
    %c1 = arith.constant 1 : index
    %c0_8 = arith.constant 0 : index
    %12 = vector.load %arg3[%c1, %c0_8] : memref<3x128xf32, #tpu.memory_space<vmem>>, vector<1x128xf32>
    %13 = vector.broadcast %12 : vector<1x128xf32> to vector<8x128xf32>
    %14 = arith.addf %11, %13 : vector<8x128xf32>
    %cst_9 = arith.constant 0.000000e+00 : f32
    %15 = vector.broadcast %cst_9 : f32 to vector<8x128xf32>
    %16 = arith.maximumf %14, %15 : vector<8x128xf32>
    %c160 = arith.constant 160 : index
    %c0_10 = arith.constant 0 : index
    %17 = vector.load %arg2[%c160, %c0_10] : memref<288x128xbf16, #tpu.memory_space<vmem>>, vector<128x128xbf16>
    %18 = arith.truncf %16 : vector<8x128xf32> to vector<8x128xbf16>
    %cst_11 = arith.constant dense<0.000000e+00> : vector<8x128xf32>
    %19 = tpu.matmul %18, %17, %cst_11 {dimension_numbers = #tpu.dot_dimension_numbers<[1], [0], [0], [1], [0, 0, 1, 1], [], []>} : vector<8x128xbf16>, vector<128x128xbf16>, vector<8x128xf32> -> vector<8x128xf32>
    %c2 = arith.constant 2 : index
    %c0_12 = arith.constant 0 : index
    %20 = vector.load %arg3[%c2, %c0_12] : memref<3x128xf32, #tpu.memory_space<vmem>>, vector<1x128xf32>
    %21 = vector.broadcast %20 : vector<1x128xf32> to vector<8x128xf32>
    %22 = arith.addf %19, %21 : vector<8x128xf32>
    %23 = math.tanh %22 : vector<8x128xf32>
    %cst_13 = arith.constant 2.000000e+00 : f32
    %24 = vector.broadcast %cst_13 : f32 to vector<8x128xf32>
    %25 = arith.mulf %23, %24 : vector<8x128xf32>
    %c0_14 = arith.constant 0 : index
    %c0_15 = arith.constant 0 : index
    %26 = vector.load %arg4[%c0_14, %c0_15] : memref<8x128xf32, #tpu.memory_space<vmem>>, vector<8x128xf32>
    tpu.vector_store %arg4[%c0_14, %c0_15], %25 {strides = array<i32>} : memref<8x128xf32, #tpu.memory_space<vmem>>, vector<8x128xf32>,
    return
  }
  func.func @transform_0(%arg0: i32) -> (i32, i32) {
    %c0_i32 = arith.constant 0 : i32
    %c0_i32_0 = arith.constant 0 : i32
    return %arg0, %c0_i32 : i32, i32
  }
  func.func @transform_1(%arg0: i32) -> (i32, i32) {
    %c0_i32 = arith.constant 0 : i32
    %c0_i32_0 = arith.constant 0 : i32
    %c0_i32_1 = arith.constant 0 : i32
    return %c0_i32, %c0_i32_0 : i32, i32
  }
  func.func @transform_2(%arg0: i32) -> (i32, i32) {
    %c0_i32 = arith.constant 0 : i32
    %c0_i32_0 = arith.constant 0 : i32
    %c0_i32_1 = arith.constant 0 : i32
    return %c0_i32, %c0_i32_0 : i32, i32
  }
  func.func @transform_3(%arg0: i32) -> (i32, i32) {
    %c0_i32 = arith.constant 0 : i32
    %c0_i32_0 = arith.constant 0 : i32
    return %arg0, %c0_i32 : i32, i32
  }
}

</mosaic_0001>

<bundles_post_ra>
// kernel: tpu_custom_call.1
= control target key start
LH: loop header
LB: loop body
LE: loop exit
PB: predicated region body
PF: predicated region fallthrough
CT: control target
= control target key end

     0   :  { %8 = vsyncpa [#allocation3], 0  ;;  %s643_s0 = inlined_call_operand.hbm [shape: f32[8,32], index: 0, kind: input, shape index: {}]   ;;  %s644_s1 = inlined_call_operand.hbm [shape: bf16[288,128], index: 1, kind: input, shape index: {}]   ;;  %s645_s2 = inlined_call_operand.vmem [shape: f32[3,128], index: 2, kind: input, shape index: {}]   ;;  %s646_s3 = inlined_call_operand.hbm [shape: f32[8,128], index: 3, kind: output, shape index: {}]  }
   0x1   :  { %9 = vsyncpa [#allocation6], 0 }
   0x2   :  { %10 = vsyncpa [#allocation4], 0  ;;  %s540_s12 = smov [#allocation2]   ;;  %s541_s14 = smov [#allocation5]  }
   0x3   :  { %s17_s13 = sshll.u32 %s540_s12, 4  ;;  %s26_s15 = sshll.u32 %s541_s14, 4  ;;  %s18_s13 = int_to_ptr.vmem [resolvable:$true] %s17_s13  ;;  %s567_s15 = int_to_ptr.vmem [resolvable:$true] %s26_s15 }
   0x4   :  { %s468_s18 = scalar_lea.hbm %s643_s0, 128 }
   0x5   :  { %p469_p0 = scmp.ne.s32.totalorder %s643_s0, %s468_s18  ;;  %p472_p1 = scmp.lt.u32.totalorder %s468_s18, %s643_s0 }
   0x7   :  { %p474_p2 = pnand %p472_p1, %p469_p0 }
   0x9   :  { %477 = shalt.err (!%p474_p2)
}
   0xa   :  { %s478_s23 = scalar_lea.vmem %s18_s13, 128  ;;  %p483_p4 = scmp.lt.s32.totalorder %s18_s13, %s18_s13 }
   0xb   :  { %p479_p3 = scmp.ne.s32.totalorder %s18_s13, %s478_s23  ;;  %p484_p5 = scmp.lt.s32.totalorder %s478_s23, %s478_s23 }
   0xd   :  { %p485_p6 = por %p484_p5, %p483_p4 }
   0xf   :  { %p486_p7 = pnand %p485_p6, %p479_p3 }
  0x11   :  { %489 = shalt.err (!%p486_p7)
}
  0x12   :  { %20 = dma.hbm_to_vmem [thread:$0]  %s643_s0, 128, %s18_s13, [#allocation3]  }
  0x13   :  { %s490_s28 = scalar_lea.hbm %s644_s1, 2304 }
  0x14   :  { %p491_p8 = scmp.ne.s32.totalorder %s644_s1, %s490_s28  ;;  %p494_p9 = scmp.lt.u32.totalorder %s490_s28, %s644_s1 }
  0x16   :  { %p496_p10 = pnand %p494_p9, %p491_p8 }
  0x18   :  { %499 = shalt.err (!%p496_p10)
}
  0x19   :  { %s500_s6 = scalar_lea.vmem %s567_s15, 2304  ;;  %p505_p12 = scmp.lt.s32.totalorder %s567_s15, %s567_s15 }
  0x1a   :  { %p501_p11 = scmp.ne.s32.totalorder %s567_s15, %s500_s6  ;;  %p506_p13 = scmp.lt.s32.totalorder %s500_s6, %s500_s6 }
  0x1c   :  { %p507_p0 = por %p506_p13, %p505_p12 }
  0x1e   :  { %p508_p1 = pnand %p507_p0, %p501_p11 }
  0x20   :  { %511 = shalt.err (!%p508_p1)
}
  0x21   :  { %s542_s0 = smov 64   ;;  %s543_s7 = smov 4  }
  0x22   :  { %32 = dma.hbm_to_vmem [thread:$0]  %s644_s1, 2304, %s567_s15, [#allocation6], %s542_s0, %s542_s0, %s543_s7  }
  0x23   :  { %534 = dma.done.wait [#allocation3], 128  }
  0x24   :  { %535 = vsyncadd [#allocation3], 4294967168 }
  0x25   :  { %536 = dma.done.wait [#allocation6], 2304  }
  0x26   :  { %537 = vsyncadd [#allocation6], 4294964992  ;;  %v544_v0 = vmov 0.0   ;;  %vm545_vm0 = vmmov 0   ;;  %v448_v1 = vld [vmem:[#allocation5] sm:$0xff]   ;;  %v449_v2 = vld [vmem:[#allocation5 + $0x8] sm:$0xff]  }
  0x27   :  { %393 = vmatprep.subr.bf16.mxu0 %v544_v0  ;;  %397 = vmatprep.mubr.msk.bf16.mxu0 %vm545_vm0, %v544_v0  ;;  %v42_v3 = vld [vmem:[#allocation2] sm:$0xff]  ;;  %v450_v4 = vld [vmem:[#allocation5 + $0x10] sm:$0xff]   ;;  %vm65_vm1 = vcmask 261120   ;;  %v452_v7 = vld [vmem:[#allocation5 + $0x20] sm:$0xff]   ;;  %s546_s15 = smov [#allocation7]  }
  0x28   :  { %401 = vmatprep.subr.bf16.mxu1 %v544_v0  ;;  %417 = vmatprep.mubr.msk.bf16.mxu1 %vm545_vm0, %v544_v0  ;;  %v43_v5 = vpack.c.bf16 %v42_v3, %v42_v3  ;;  %v451_v6 = vld [vmem:[#allocation5 + $0x18] sm:$0xff]   ;;  %v453_v8 = vld [vmem:[#allocation5 + $0x28] sm:$0xff]   ;;  %v454_v9 = vld [vmem:[#allocation5 + $0x30] sm:$0xff]   ;;  %s340_s16 = sshll.u32 %s546_s15, 4  ;;  %s341_s16 = int_to_ptr.vmem [resolvable:$true] %s340_s16 }
  0x29   :  { %394 = vmatpush3.bf16.msra.mxu0 %v448_v1  ;;  %402 = vmatpush3.bf16.msra.mxu1 %v450_v4  ;;  %v455_v10 = vld [vmem:[#allocation5 + $0x38] sm:$0xff]   ;;  %v456_v11 = vld [vmem:[#allocation5 + $0x40] sm:$0xff]   ;;  %v457_v12 = vld [vmem:[#allocation5 + $0x48] sm:$0xff]   ;;  %s512_s17 = scalar_lea.vmem %s341_s16, 128  ;;  %p517_p3 = scmp.lt.s32.totalorder %s341_s16, %s341_s16 }
  0x2a   :  { %395 = vmatprep.subr.bf16.mxu0 %v544_v0  ;;  %403 = vmatprep.subr.bf16.mxu1 %v544_v0  ;;  %v458_v13 = vld [vmem:[#allocation5 + $0x50] sm:$0xff]   ;;  %v459_v14 = vld [vmem:[#allocation5 + $0x58] sm:$0xff]   ;;  %v460_v15 = vld [vmem:[#allocation5 + $0x60] sm:$0xff]   ;;  %p513_p2 = scmp.ne.s32.totalorder %s341_s16, %s512_s17  ;;  %p518_p4 = scmp.lt.s32.totalorder %s512_s17, %s512_s17 }
  0x2b   :  { %v461_v16 = vld [vmem:[#allocation5 + $0x68] sm:$0xff]   ;;  %v462_v17 = vld [vmem:[#allocation5 + $0x70] sm:$0xff]   ;;  %v463_v18 = vld [vmem:[#allocation5 + $0x78] sm:$0xff]  }
  0x2c   :  { %v350_v19 = vld [vmem:[%s645_s2] ss:$0 sm:$0xff]  ;;  %v464_v27 = vld [vmem:[#allocation5 + $0x80] sm:$0xff]   ;;  %v465_v28 = vld [vmem:[#allocation5 + $0x88] sm:$0xff]   ;;  %p519_p5 = por %p518_p4, %p517_p3 }
  0x2d   :  { %396 = vmatpush3.bf16.msra.mxu0 %v449_v2  ;;  %404 = vmatpush3.bf16.msra.mxu1 %v451_v6  ;;  %v354_v29 = vld [vmem:[%s645_s2 + $0x1] ss:$0 sm:$0xff]  ;;  %v363_v37 = vld [vmem:[%s645_s2 + $0x2] ss:$0 sm:$0xff] }
  0x2e   :  { %421 = vmatprep.subr.bf16.mxu0 %v544_v0  ;;  %405 = vmatprep.subr.bf16.mxu1 %v544_v0  ;;  %p520_p6 = pnand %p519_p5, %p513_p2 }
  0x30   :  { %398 = vmatmul.mubr.msk.bf16.vlgmr.msra.gmra.mrb[0].mxu0 %vm65_vm1, %v43_v5 }
  0x31   :  { %437 = vmatprep.mubr.msk.bf16.mxu0 %vm545_vm0, %v544_v0  ;;  %406 = vmatpush3.bf16.msra.mxu1 %v452_v7 }
  0x32   :  { %407 = vmatprep.subr.bf16.mxu1 %v544_v0  ;;  %422 = vmatpush3.bf16.msra.mxu0 %v458_v13 }
  0x33   :  { %423 = vmatprep.subr.bf16.mxu0 %v544_v0 }
  0x35   :  { %408 = vmatpush3.bf16.msra.mxu1 %v453_v8 }
  0x36   :  { %409 = vmatprep.subr.bf16.mxu1 %v544_v0  ;;  %424 = vmatpush3.bf16.msra.mxu0 %v459_v14 }
  0x37   :  { %425 = vmatprep.subr.bf16.mxu0 %v544_v0 }
  0x39   :  { %410 = vmatpush3.bf16.msra.mxu1 %v454_v9 }
  0x3a   :  { %411 = vmatprep.subr.bf16.mxu1 %v544_v0  ;;  %426 = vmatpush3.bf16.msra.mxu0 %v460_v15 }
  0x3b   :  { %427 = vmatprep.subr.bf16.mxu0 %v544_v0 }
  0x3d   :  { %412 = vmatpush3.bf16.msra.mxu1 %v455_v10 }
  0x3e   :  { %413 = vmatprep.subr.bf16.mxu1 %v544_v0  ;;  %428 = vmatpush3.bf16.msra.mxu0 %v461_v16 }
  0x3f   :  { %429 = vmatprep.subr.bf16.mxu0 %v544_v0 }
  0x41   :  { %414 = vmatpush3.bf16.msra.mxu1 %v456_v11 }
  0x42   :  { %415 = vmatprep.subr.bf16.mxu1 %v544_v0  ;;  %430 = vmatpush3.bf16.msra.mxu0 %v462_v17 }
  0x43   :  { %431 = vmatprep.subr.bf16.mxu0 %v544_v0 }
  0x45   :  { %416 = vmatpush3.bf16.msra.mxu1 %v457_v12 }
  0x46   :  { %432 = vmatpush3.bf16.msra.mxu0 %v463_v18 }
  0x47   :  { %433 = vmatprep.subr.bf16.mxu0 %v544_v0 }
  0x4a   :  { %434 = vmatpush3.bf16.msra.mxu0 %v464_v27 }
  0x4b   :  { %435 = vmatprep.subr.bf16.mxu0 %v544_v0 }
  0x4e   :  { %436 = vmatpush3.bf16.msra.mxu0 %v465_v28 }
 0x103   :  { %v103_v20 = vpop.f32.mrb[0].mxu0 }
 0x104   :  { %v104_v21 = vadd.f32 %v350_v19, %v103_v20  ;;  %v399_v22 = vpop.f32.mrb[1].mxu0 }
 0x105   :  { %v106_v23 = vpop.f32.mrb[2].mxu0 }
 0x106   :  { %v109_v24 = vmax.f32 %v104_v21, 0.0  ;;  %v400_v25 = vpop.f32.mrb[3].mxu0 }
 0x108   :  { %v126_v26 = vpack.c.bf16 %v109_v24, %v109_v24 }
 0x10a   :  { %418 = vmatmul.mubr.bf16.vlgmr.msra.gmra.mrb[0].mxu1 %v126_v26 }
 0x1dd   :  { %v214_v30 = vpop.f32.mrb[0].mxu1 }
 0x1de   :  { %v215_v31 = vadd.f32 %v354_v29, %v214_v30  ;;  %v419_v32 = vpop.f32.mrb[1].mxu1 }
 0x1df   :  { %v217_v33 = vpop.f32.mrb[2].mxu1 }
 0x1e0   :  { %v220_v34 = vmax.f32 %v215_v31, 0.0  ;;  %v420_v35 = vpop.f32.mrb[3].mxu1 }
 0x1e2   :  { %v237_v36 = vpack.c.bf16 %v220_v34, %v220_v34 }
 0x1e4   :  { %438 = vmatmul.mubr.bf16.vlgmr.msra.gmra.mrb[4].mxu0 %v237_v36 }
 0x2b7   :  { %v325_v38 = vpop.f32.mrb[4].mxu0 }
 0x2b8   :  { %v326_v39 = vadd.f32 %v363_v37, %v325_v38  ;;  %v439_v40 = vpop.f32.mrb[5].mxu0 }
 0x2b9   :  { %v328_v41 = vpop.f32.mrb[6].mxu0 }
 0x2ba   :  { %466 = vtanh.f32 %v326_v39  ;;  %v440_v42 = vpop.f32.mrb[7].mxu0 }
 0x2c4   :  { %v467_v43 = vpop.eup %466 }
 0x2c5   :  { %v332_v44 = vmul.f32 2.0, %v467_v43 }
 0x2c7   :  { %333 = vst [vmem:[#allocation7] sm:$0xff] %v332_v44 }
 0x2c8   :  { %523 = shalt.err (!%p520_p6)
}
 0x2c9   :  { %s524_s19 = scalar_lea.hbm %s646_s3, 128 }
 0x2ca   :  { %p525_p7 = scmp.ne.s32.totalorder %s646_s3, %s524_s19  ;;  %p528_p8 = scmp.lt.u32.totalorder %s524_s19, %s646_s3 }
 0x2cc   :  { %p530_p9 = pnand %p528_p8, %p525_p7 }
 0x2ce   :  { %533 = shalt.err (!%p530_p9)
}
 0x2cf   :  { %343 = dma.vmem_to_hbm [thread:$0]  %s341_s16, 128, %s646_s3, [#allocation4]  }
 0x2d0   :  { %538 = dma.done.wait [#allocation4], 128  }
 0x2d1   :  { %539 = vsyncadd [#allocation4], 4294967168 }
 0x2d2   :  { %347 = vsyncpa [#allocation3], 1 }
 0x2d3   :  { %348 = vsyncpa [#allocation6], 1 }
 0x2d4   :  { %349 = vsyncpa [#allocation4], 1 }

</bundles_post_ra>
